<compile_context>
chip_gen: v7x
topology: tpu7x:2x2x1
jax: 0.10.0
libtpu: 0.0.40
codegen_flags: <defaults>
</compile_context>

<pallas_src>
import functools

import jax
import jax.numpy as jnp
from jax.experimental import pallas as pl
from jax.experimental.pallas import tpu as pltpu


def _irm_partial_kernel(y_ref, lab_ref, o_ref, *, n_rows: int):
    """Per-tile partial sums of (E_softmax[y] - y_label), split by row parity.

    y_ref  : (TN, C) logits tile (original dtype; cast to f32 in-kernel)
    lab_ref: (TN, 1) int32 labels tile
    o_ref  : (1, 1, 2) f32 -> [sum over even global rows, sum over odd global rows]
    """
    i = pl.program_id(0)
    y = y_ref[...].astype(jnp.float32)                  # (TN, C), cast per-tile (VPU, free)
    labels = lab_ref[...]                               # (TN, 1) int32
    tn, c = y.shape

    # one-hot(labels) via lane-iota compare (no gather)
    col = jax.lax.broadcasted_iota(jnp.int32, (tn, c), 1)
    onehot = (col == labels).astype(jnp.float32)        # (TN, C)

    # stable softmax expectation minus label logit, fused into 3 lane reductions
    m = jnp.max(y, axis=-1, keepdims=True)              # (TN, 1)   XLU
    e = jnp.exp(y - m)                                  # (TN, C)   EUP (1 exp/elem)
    denom = jnp.sum(e, axis=-1, keepdims=True)          # (TN, 1)   XLU
    inv = pl.reciprocal(denom, approx=True)             # EUP approx; keeps budget for exp
    row_term = jnp.sum((e * inv - onehot) * y,
                       axis=-1, keepdims=True)          # (TN, 1)   XLU (fused reduction)

    # global row index -> validity (partial last tile) and env parity (even/odd)
    g_row = jax.lax.broadcasted_iota(jnp.int32, (tn, 1), 0) + i * tn
    valid = g_row < n_rows                               # (TN, 1)
    parity = g_row & 1                                   # 0 -> env1 (y[0::2]), 1 -> env2
    lane = jax.lax.broadcasted_iota(jnp.int32, (tn, 2), 1)
    sel = (lane == parity) & valid                       # (TN, 2)

    env_sums = jnp.sum(jnp.where(sel, row_term, 0.0),
                       axis=0, keepdims=True)            # (1, 2)
    o_ref[0] = env_sums                                  # store into (1, 2) slot


def invariance_penalty_loss(y: jax.Array, labels: jax.Array) -> jax.Array:
    """Pallas implementation of InvariancePenaltyLoss.forward (scale = 1.0)."""
    assert y.ndim == 2 and labels.ndim == 1 and y.shape[0] == labels.shape[0]
    n, c = y.shape
    assert n >= 2, "need at least one sample per environment"

    labels2d = labels.astype(jnp.int32).reshape(n, 1)    # tiny, contiguous

    # Row-tile size: keep the double-buffered y pipeline ~8 MiB so it fits every
    # generation's scoped-VMEM default (v5e 16 / v6e 32 / v7x 32-of-64 MiB).
    itemsize = jnp.dtype(y.dtype).itemsize
    bytes_per_row = max(1, c * itemsize)
    tn = max(8, min(1024, (4 * 1024 * 1024 // bytes_per_row) // 8 * 8))
    tn = min(tn, ((n + 7) // 8) * 8)                     # don't grossly exceed N
    num_tiles = pl.cdiv(n, tn)

    kernel = functools.partial(_irm_partial_kernel, n_rows=n)
    partials = pl.pallas_call(
        kernel,
        out_shape=jax.ShapeDtypeStruct((num_tiles, 1, 2), jnp.float32),
        grid=(num_tiles,),
        in_specs=[
            pl.BlockSpec((tn, c), lambda i: (i, 0)),     # logits, original dtype
            pl.BlockSpec((tn, 1), lambda i: (i, 0)),     # labels, co-tiled
        ],
        out_specs=pl.BlockSpec((1, 1, 2), lambda i: (i, 0, 0)),
        compiler_params=pltpu.CompilerParams(
            dimension_semantics=("parallel",),           # tiles independent -> 2 TCs on v7x
            vmem_limit_bytes=32 * 1024 * 1024,
        ),
        cost_estimate=pl.CostEstimate(
            flops=6 * n * c,
            transcendentals=n * c + n,
            bytes_accessed=n * c * itemsize + n * 4 + num_tiles * 8,
        ),
    )(y, labels2d)

    # Tiny epilogue in plain JAX: global sums -> per-env means -> product.
    sums = jnp.sum(partials, axis=(0, 1))                # (2,)
    n1 = (n + 1) // 2                                    # len(y[0::2])
    n2 = n // 2                                          # len(y[1::2])
    g1 = sums[0] / n1
    g2 = sums[1] / n2
    return g1 * g2


def _reference(y, labels):
    """Pure-JAX reference (analytic grad of CE wrt scale at scale=1)."""
    y = y.astype(jnp.float32)

    def grad_half(yh, lh):
        p = jax.nn.softmax(yh, axis=-1)
        exp_y = jnp.sum(p * yh, axis=-1)
        lbl_y = jnp.take_along_axis(yh, lh[:, None], axis=-1)[:, 0]
        return jnp.mean(exp_y - lbl_y)

    g1 = grad_half(y[0::2], labels[0::2])
    g2 = grad_half(y[1::2], labels[1::2])
    return g1 * g2


if __name__ == "__main__":
    # Note: InvariancePenaltyLoss's `scale` parameter is a dummy (always 1.0);
    # no other parameters exist, so nothing to initialize.
    key = jax.random.PRNGKey(0)
    ky, kl = jax.random.split(key)
    N, C = 8, 32
    y = jax.random.normal(ky, (N, C), dtype=jnp.float32)
    labels = jax.random.randint(kl, (N,), 0, C, dtype=jnp.int32)

    penalty = jax.block_until_ready(invariance_penalty_loss(y, labels))
    expected = _reference(y, labels)
    # tolerance 5e-3: approx EUP reciprocal in the softmax normalization
    assert jnp.allclose(penalty, expected, atol=5e-3, rtol=5e-3), (penalty, expected)

    # odd batch + bf16 logits: exercises parity masking, partial tile, in-kernel cast
    N2, C2 = 13, 40
    y2 = jax.random.normal(jax.random.PRNGKey(1), (N2, C2), dtype=jnp.bfloat16)
    l2 = jax.random.randint(jax.random.PRNGKey(2), (N2,), 0, C2, dtype=jnp.int32)
    p2 = jax.block_until_ready(invariance_penalty_loss(y2, l2))
    e2 = _reference(y2, l2)
    assert jnp.allclose(p2, e2, atol=5e-3, rtol=5e-3), (p2, e2)

    print("KERNEL_OK")
</pallas_src>

<mosaic_0001>
module attributes {stable_mosaic.version = 11 : i64} {
  func.func @_irm_partial_kernel(%arg0: i32, %arg1: memref<8x32xf32, #tpu.memory_space<vmem>>, %arg2: memref<8x1xi32, #tpu.memory_space<vmem>>, %arg3: memref<1x1x2xf32, #tpu.memory_space<vmem>>) attributes {dimension_semantics = [#tpu.dimension_semantics<parallel>], iteration_bounds = array<i64: 1>, scalar_prefetch = 0 : i64, scratch_operands = 0 : i64, tpu.core_type = #tpu.core_type<tc>, window_params = [{transform_indices = @transform_0, window_bounds = array<i64: 8, 32>}, {transform_indices = @transform_1, window_bounds = array<i64: 8, 1>}, {transform_indices = @transform_2, window_bounds = array<i64: 1, 1, 2>}]} {
    %c0 = arith.constant 0 : index
    %c0_0 = arith.constant 0 : index
    %0 = vector.load %arg1[%c0, %c0_0] : memref<8x32xf32, #tpu.memory_space<vmem>>, vector<8x32xf32>
    %c0_1 = arith.constant 0 : index
    %c0_2 = arith.constant 0 : index
    %1 = vector.load %arg2[%c0_1, %c0_2] : memref<8x1xi32, #tpu.memory_space<vmem>>, vector<8x1xi32>
    %2 = tpu.iota {dimensions = array<i32: 1>} : vector<8x32xi32>
    %3 = vector.broadcast %1 : vector<8x1xi32> to vector<8x32xi32>
    %4 = arith.cmpi eq, %2, %3 : vector<8x32xi32>
    %5 = arith.extui %4 : vector<8x32xi1> to vector<8x32xi32>
    %6 = arith.sitofp %5 : vector<8x32xi32> to vector<8x32xf32>
    %cst = arith.constant dense<0xFF800000> : vector<8xf32>
    %7 = vector.multi_reduction <maximumf>, %0, %cst [1] : vector<8x32xf32> to vector<8xf32>
    %8 = vector.shape_cast %7 : vector<8xf32> to vector<8x1xf32>
    %9 = vector.broadcast %8 : vector<8x1xf32> to vector<8x32xf32>
    %10 = arith.subf %0, %9 : vector<8x32xf32>
    %11 = math.exp %10 : vector<8x32xf32>
    %cst_3 = arith.constant dense<0.000000e+00> : vector<8xf32>
    %12 = vector.multi_reduction <add>, %11, %cst_3 [1] : vector<8x32xf32> to vector<8xf32>
    %13 = vector.shape_cast %12 : vector<8xf32> to vector<8x1xf32>
    %14 = tpu.reciprocal %13 {approx = true} : vector<8x1xf32> -> vector<8x1xf32>
    %15 = vector.broadcast %14 : vector<8x1xf32> to vector<8x32xf32>
    %16 = arith.mulf %11, %15 : vector<8x32xf32>
    %17 = arith.subf %16, %6 : vector<8x32xf32>
    %18 = arith.mulf %17, %0 : vector<8x32xf32>
    %cst_4 = arith.constant dense<0.000000e+00> : vector<8xf32>
    %19 = vector.multi_reduction <add>, %18, %cst_4 [1] : vector<8x32xf32> to vector<8xf32>
    %20 = vector.shape_cast %19 : vector<8xf32> to vector<8x1xf32>
    %21 = tpu.iota {dimensions = array<i32: 0>} : vector<8x1xi32>
    %c8_i32 = arith.constant 8 : i32
    %22 = arith.muli %arg0, %c8_i32 : i32
    %23 = vector.broadcast %22 : i32 to vector<8x1xi32>
    %24 = arith.addi %21, %23 : vector<8x1xi32>
    %c8_i32_5 = arith.constant 8 : i32
    %25 = vector.broadcast %c8_i32_5 : i32 to vector<8x1xi32>
    %26 = arith.cmpi slt, %24, %25 : vector<8x1xi32>
    %c1_i32 = arith.constant 1 : i32
    %27 = vector.broadcast %c1_i32 : i32 to vector<8x1xi32>
    %28 = arith.andi %24, %27 : vector<8x1xi32>
    %29 = tpu.iota {dimensions = array<i32: 1>} : vector<8x2xi32>
    %30 = vector.broadcast %28 : vector<8x1xi32> to vector<8x2xi32>
    %31 = arith.cmpi eq, %29, %30 : vector<8x2xi32>
    %32 = vector.broadcast %26 : vector<8x1xi1> to vector<8x2xi1>
    %33 = arith.andi %31, %32 : vector<8x2xi1>
    %cst_6 = arith.constant 0.000000e+00 : f32
    %34 = vector.shape_cast %20 : vector<8x1xf32> to vector<8x1xf32>
    %35 = vector.broadcast %34 : vector<8x1xf32> to vector<8x2xf32>
    %36 = vector.broadcast %cst_6 : f32 to vector<8x2xf32>
    %37 = arith.select %33, %35, %36 : vector<8x2xi1>, vector<8x2xf32>
    %cst_7 = arith.constant dense<0.000000e+00> : vector<2xf32>
    %38 = vector.multi_reduction <add>, %37, %cst_7 [0] : vector<8x2xf32> to vector<2xf32>
    %39 = vector.shape_cast %38 : vector<2xf32> to vector<1x2xf32>
    %c0_8 = arith.constant 0 : index
    %c0_9 = arith.constant 0 : index
    %c0_10 = arith.constant 0 : index
    %40 = vector.load %arg3[%c0_8, %c0_9, %c0_10] : memref<1x1x2xf32, #tpu.memory_space<vmem>>, vector<1x1x2xf32>
    %41 = vector.shape_cast %40 : vector<1x1x2xf32> to vector<1x2xf32>
    %42 = vector.shape_cast %39 : vector<1x2xf32> to vector<1x1x2xf32>
    tpu.vector_store %arg3[%c0_8, %c0_9, %c0_10], %42 {strides = array<i32>} : memref<1x1x2xf32, #tpu.memory_space<vmem>>, vector<1x1x2xf32>,
    return
  }
  func.func @transform_0(%arg0: i32) -> (i32, i32) {
    %c0_i32 = arith.constant 0 : i32
    %c0_i32_0 = arith.constant 0 : i32
    return %arg0, %c0_i32 : i32, i32
  }
  func.func @transform_1(%arg0: i32) -> (i32, i32) {
    %c0_i32 = arith.constant 0 : i32
    %c0_i32_0 = arith.constant 0 : i32
    return %arg0, %c0_i32 : i32, i32
  }
  func.func @transform_2(%arg0: i32) -> (i32, i32, i32) {
    %c0_i32 = arith.constant 0 : i32
    %c0_i32_0 = arith.constant 0 : i32
    %c0_i32_1 = arith.constant 0 : i32
    return %arg0, %c0_i32, %c0_i32_0 : i32, i32, i32
  }
}

</mosaic_0001>

<bundles_post_ra>
// kernel: tpu_custom_call.1
= control target key start
LH: loop header
LB: loop body
LE: loop exit
PB: predicated region body
PF: predicated region fallthrough
CT: control target
= control target key end

     0   :  { %vm22_vm0 = vcmask 261120   ;;  %s154_s0 = inlined_call_operand.vmem [shape: f32[8,32], index: 0, kind: input, shape index: {}]   ;;  %s155_s1 = inlined_call_operand.vmem [shape: s32[8,1], index: 1, kind: input, shape index: {}]   ;;  %s156_s2 = inlined_call_operand.hbm [shape: f32[1,1,2], index: 2, kind: output, shape index: {}]  }
   0x1   :  { %v12_v0 = vld [vmem:[%s154_s0] sm:$0xff] }
   0x2   :  { %7 = vsyncpa [#allocation3], 0  ;;  %v23_v1 = vsel %vm22_vm0, %v12_v0, -inf  ;;  %v13_v2 = vld [vmem:[%s155_s1] sm:$0xff]  ;;  %v109_v3 = vmov 0   ;;  %v14_v9 = vlaneseq  ;;  %v110_v17 = vmov 0.0  }
   0x3   :  { %24 = vmax.xlane.f32.xlu0 %v23_v1  ;;  %79 = vset.pattern.permute.xlu1 %v109_v3  ;;  %vm51_vm3 = vcmask 15360   ;;  %s111_s0 = smov [#allocation2]   ;;  %vm59_vm4 = vcmask 8192  }
   0x4   :  { %80 = vset.pattern.permute.xlu0 %v109_v3  ;;  %17 = vperm.xlu1 %79, %v13_v2   ;;  %v40_v10 = vshrl.u32 %v14_v9, 7  ;;  %v15_v11 = vand.u32 127, %v14_v9  ;;  %s67_s1 = sshll.u32 %s111_s0, 4  ;;  %s68_s1 = int_to_ptr.vmem [resolvable:$true] %s67_s1 }
   0x5   :  { %s85_s13 = scalar_lea.vmem %s68_s1, 16  ;;  %s89_s14 = scalar_lea.vmem %s68_s1, 32 }
   0x6   :  { %v45_v12 = vand.u32 1, %v40_v10  ;;  %p86_p0 = scmp.ne.s32.totalorder %s68_s1, %s85_s13  ;;  %p90_p1 = scmp.lt.s32.totalorder %s68_s1, %s68_s1 }
   0x7   :  { %p91_p2 = scmp.lt.s32.totalorder %s89_s14, %s85_s13 }
   0x8   :  { %vm135_vm1 = vcmp.eq.s32.totalorder %v15_v11, %v45_v12 }
   0x9   :  { %p92_p3 = por %p91_p2, %p90_p1 }
   0xb   :  { %p93_p4 = pnand %p92_p3, %p86_p0 }
  0x83   :  { %v18_v15 = vpop.permute.xlu1 %17 }
  0x84   :  { %vm19_vm2 = vcmp.eq.s32.totalorder %v15_v11, %v18_v15 }
  0x85   :  { %v75_v18 = vsel %vm19_vm2, 1.0, %v110_v17 }
  0x90   :  { %v25_v4 = vpop.xlane.xlu0 %24 }
  0x91   :  { %v26_v5 = vsub.f32 %v12_v0, %v25_v4 }
  0x93   :  { %v27_v6 = vmul.f32 1.442695, %v26_v5 }
  0x95   :  { %81 = vpow2.f32 %v27_v6 }
  0x9f   :  { %v82_v7 = vpop.eup %81 }
  0xa0   :  { %v29_v8 = vsel %vm22_vm0, %v82_v7, 0.0 }
  0xa1   :  { %30 = vadd.xlane.f32.xlu0 %v29_v8 }
 0x12e   :  { %v31_v14 = vpop.xlane.xlu0 %30 }
 0x12f   :  { %83 = vrcp.f32 %v31_v14 }
 0x139   :  { %v84_v16 = vpop.eup %83 }
 0x13a   :  { %v33_v19 = vmul.f32 %v84_v16, %v82_v7 }
 0x13c   :  { %v34_v20 = vsub.f32 %v33_v19, %v75_v18 }
 0x13e   :  { %v35_v21 = vmul.f32 %v34_v20, %v12_v0 }
 0x140   :  { %v36_v22 = vsel %vm22_vm0, %v35_v21, 0.0 }
 0x141   :  { %37 = vadd.xlane.f32.xlu1 %v36_v22 }
 0x1ce   :  { %v38_v23 = vpop.xlane.xlu1 %37 }
 0x1cf   :  { %v50_v24 = vsel %vm135_vm1, %v38_v23, 0.0 }
 0x1d0   :  { %v52_v25 = vsel %vm51_vm3, %v50_v24, 0.0 }
 0x1d1   :  { %v53_v26 = vrot.slane %v52_v25, 4 }
 0x1d3   :  { %v54_v27 = vadd.f32 %v53_v26, %v52_v25 }
 0x1d5   :  { %v55_v28 = vrot.slane %v54_v27, 2 }
 0x1d7   :  { %v56_v29 = vadd.f32 %v55_v28, %v54_v27 }
 0x1d9   :  { %v57_v30 = vrot.slane %v56_v29, 1 }
 0x1db   :  { %v58_v31 = vadd.f32 %v57_v30, %v56_v29 }
 0x1dd   :  { %60 = vst.msk [vmem:[#allocation2] sm:$0x1] %vm59_vm4, %v58_v31 }
 0x1de   :  { %96 = shalt.err (!%p93_p4)
}
 0x1df   :  { %s97_s17 = scalar_lea.hbm %s156_s2, 16 }
 0x1e0   :  { %p98_p5 = scmp.ne.s32.totalorder %s156_s2, %s97_s17  ;;  %p101_p6 = scmp.lt.u32.totalorder %s97_s17, %s156_s2 }
 0x1e2   :  { %p103_p7 = pnand %p101_p6, %p98_p5 }
 0x1e4   :  { %106 = shalt.err (!%p103_p7)
}
 0x1e5   :  { %70 = dma.vmem_to_hbm [thread:$0]  %s68_s1, 16, %s156_s2, [#allocation3]  }
 0x1e6   :  { %107 = dma.done.wait [#allocation3], 16  }
 0x1e7   :  { %108 = vsyncadd [#allocation3], 4294967280 }
 0x1e8   :  { %74 = vsyncpa [#allocation3], 1 }

</bundles_post_ra>
